<compile_context>
chip_gen: v7x
topology: tpu7x:2x2x1
jax: 0.10.0
libtpu: 0.0.40
codegen_flags: <defaults>
</compile_context>

<pallas_src>
import jax
import jax.numpy as jnp
from jax import lax
from jax.experimental import pallas as pl
from jax.experimental.pallas import tpu as pltpu

GENERATORCONFIGS = {
    "mnist": (512, 28),
    "fmnist": (512, 28),
    "emnist": (512, 28),
    "rmnist": (512, 28),
    "cifar": (512, 32),
    "pacs": (512, 224),
}

BN_EPS = 1e-5
LEAKY_SLOPE = 0.01  # PyTorch F.leaky_relu default


def _generator_kernel(labels_ref,            # SMEM scalar-prefetch: (S, B) int32
                      eps_ref,               # (1, B, z_dim) f32
                      w1e_ref,               # (z_dim, hidden) bf16
                      w1c_ref,               # (n_class, hidden) f32
                      affine_ref,            # (3, hidden) f32: gamma | beta | b2(pad)
                      w2t_ref,               # (z_dim, hidden) bf16
                      out_ref,               # (1, B, z_dim) f32
                      cls_ref):              # VMEM scratch (B, hidden) f32
    """RNG-free fused forward: gather -> Linear -> BN(train) -> ReLU -> Linear -> LeakyReLU."""
    step = pl.program_id(0)
    _, B, z_dim = eps_ref.shape

    # ---- class-embedding gather: one_hot(labels) @ W1_cls == W1_cls[label] ----
    # Static unroll over the small batch; label index comes from SMEM (scalar).
    for b in range(B):
        lab = labels_ref[step, b]
        cls_ref[pl.ds(b, 1), :] = w1c_ref[pl.ds(lab, 1), :]

    # ---- fc layer: eps @ W1_eps (MXU, bf16 operands, f32 accum) + class rows ----
    eps = eps_ref[0]                                              # (B, z_dim)
    h = jnp.dot(eps.astype(jnp.bfloat16), w1e_ref[...],
                preferred_element_type=jnp.float32)
    h = h + cls_ref[...]
    # fc bias b1 intentionally omitted: cancels exactly under training-mode BN.

    # ---- BatchNorm1d (training: batch mean, biased centered var) + ReLU -------
    affine = affine_ref[...]
    gamma = affine[0:1, :]
    beta = affine[1:2, :]
    b2 = affine[2:3, :z_dim]

    inv_b = jnp.float32(1.0 / B)
    mean = jnp.sum(h, axis=0, keepdims=True) * inv_b
    centered = h - mean
    var = jnp.sum(centered * centered, axis=0, keepdims=True) * inv_b
    scale = gamma * lax.rsqrt(var + BN_EPS)                       # EUP rsqrt
    h = jnp.maximum(centered * scale + beta, 0.0)                 # FMA + ReLU

    # ---- representation layer (lane-dense W2^T) + LeakyReLU(0.01) -------------
    o = lax.dot_general(h.astype(jnp.bfloat16), w2t_ref[...],
                        dimension_numbers=(((1,), (1,)), ((), ())),
                        preferred_element_type=jnp.float32) + b2
    out_ref[0] = jnp.where(o >= 0.0, o, LEAKY_SLOPE * o)


@jax.jit
def generator_pallas(labels_steps, eps_steps, w1_eps, w1_cls, affine, w2t):
    S, B = labels_steps.shape
    z_dim, hidden = w1_eps.shape
    n_class = w1_cls.shape[0]

    grid_spec = pltpu.PrefetchScalarGridSpec(
        num_scalar_prefetch=1,                                     # labels -> SMEM
        grid=(S,),
        in_specs=[
            pl.BlockSpec((1, B, z_dim), lambda s, lab: (s, 0, 0)),   # eps (per step)
            pl.BlockSpec((z_dim, hidden), lambda s, lab: (0, 0)),    # W1[:z_dim]  (resident)
            pl.BlockSpec((n_class, hidden), lambda s, lab: (0, 0)),  # W1[z_dim:]  (resident)
            pl.BlockSpec((3, hidden), lambda s, lab: (0, 0)),        # gamma|beta|b2 (resident)
            pl.BlockSpec((z_dim, hidden), lambda s, lab: (0, 0)),    # W2^T        (resident)
        ],
        out_specs=pl.BlockSpec((1, B, z_dim), lambda s, lab: (s, 0, 0)),
        scratch_shapes=[pltpu.VMEM((B, hidden), jnp.float32)],       # gathered class rows
    )
    return pl.pallas_call(
        _generator_kernel,
        out_shape=jax.ShapeDtypeStruct((S, B, z_dim), jnp.float32),
        grid_spec=grid_spec,
        compiler_params=pltpu.CompilerParams(
            dimension_semantics=("parallel",)),                      # steps independent
    )(labels_steps, eps_steps, w1_eps, w1_cls, affine, w2t)


def generator_forward_steps(labels_steps, params, *, key):
    """S independent Generator.forward calls fused into ONE pallas_call.

    labels_steps: (S, B) int labels.  Returns (z [S,B,z_dim], eps [S,B,z_dim]).
    """
    S, B = labels_steps.shape
    z_dim = params["w2t"].shape[0]
    eps = jax.random.uniform(key, (S, B, z_dim), jnp.float32)       # == torch.rand
    out = generator_pallas(labels_steps.astype(jnp.int32), eps,
                           params["w1_eps"], params["w1_cls"],
                           params["affine"], params["w2t"])
    return out, eps


def generator_forward(labels, params, *, key):
    """Single Generator.forward (one batch). Returns (z, eps)."""
    if labels.ndim != 1:
        # TODO(synk): 2-D soft-label path (module uses `labels` directly as
        # y_input) is not fused into the kernel.
        raise NotImplementedError("only 1-D integer labels are supported")
    out, eps = generator_forward_steps(labels[None, :], params, key=key)
    return out[0], eps[0]


def init_params(key, n_class, z_dim, hidden):
    """Synthetic params (PyTorch Linear-style fan-in uniform init)."""
    in_dim = z_dim + n_class
    k1, k2, k3, k4, k5, k6 = jax.random.split(key, 6)
    lim1 = 1.0 / jnp.sqrt(in_dim)
    lim2 = 1.0 / jnp.sqrt(hidden)
    w1 = jax.random.uniform(k1, (in_dim, hidden), jnp.float32, -lim1, lim1)
    gamma = jax.random.uniform(k5, (1, hidden), jnp.float32, 0.5, 1.5)
    beta = jax.random.uniform(k6, (1, hidden), jnp.float32, -0.2, 0.2)
    b2 = jax.random.uniform(k4, (1, z_dim), jnp.float32, -lim2, lim2)
    w2 = jax.random.uniform(k3, (hidden, z_dim), jnp.float32, -lim2, lim2)
    # gamma / beta / b2 packed into one (3, hidden) slab -> single DMA descriptor.
    affine = jnp.zeros((3, hidden), jnp.float32)
    affine = affine.at[0, :].set(gamma[0])
    affine = affine.at[1, :].set(beta[0])
    affine = affine.at[2, :z_dim].set(b2[0])
    return {
        # W1 split at z_dim: eps rows kept bf16 (MXU operand); class rows kept
        # f32 (never touch the MXU - they are row-gathered on the VPU path).
        "w1_eps": w1[:z_dim].astype(jnp.bfloat16),
        "w1_cls": w1[z_dim:],
        # b1 kept ONLY for the reference check: it cancels exactly under
        # training-mode BatchNorm, so the kernel never loads it.
        "b1": jax.random.uniform(k2, (1, hidden), jnp.float32, -lim1, lim1),
        "gamma": gamma,
        "beta": beta,
        # W2 stored transposed (z_dim, hidden): lane-dense bf16 tile.
        "w2t": w2.T.astype(jnp.bfloat16),
        "b2": b2,
        "affine": affine,
    }
    # TODO(synk): BatchNorm running_mean/running_var updates (stateful) are not
    # modeled; only the training-mode forward output is produced.


def _reference(eps, labels, p, n_class):
    """Pure-JAX mirror (bf16 matmul operands, f32 stats), with the fc bias b1
    INCLUDED to demonstrate its exact cancellation under training-mode BN."""
    onehot = jax.nn.one_hot(labels, n_class, dtype=jnp.float32)
    h = (jnp.dot(eps.astype(jnp.bfloat16), p["w1_eps"],
                 preferred_element_type=jnp.float32)
         + jnp.dot(onehot, p["w1_cls"])
         + p["b1"])
    mean = jnp.mean(h, axis=0, keepdims=True)
    var = jnp.mean((h - mean) ** 2, axis=0, keepdims=True)
    h = (h - mean) * lax.rsqrt(var + BN_EPS)
    h = h * p["gamma"] + p["beta"]
    h = jnp.maximum(h, 0.0)
    o = lax.dot_general(h.astype(jnp.bfloat16), p["w2t"],
                        dimension_numbers=(((1,), (1,)), ((), ())),
                        preferred_element_type=jnp.float32) + p["b2"]
    return jnp.where(o >= 0.0, o, LEAKY_SLOPE * o)


if __name__ == "__main__":
    # Shapes consistent with the module: dataset='cifar' -> hidden_dim = 512.
    num_classes = 10
    z_dim = 32
    hidden_dim, _ = GENERATORCONFIGS["cifar"]
    batch_size = 8

    key = jax.random.PRNGKey(0)
    k_param, k_label, k_eps, k_label_s, k_eps_s = jax.random.split(key, 5)

    params = init_params(k_param, num_classes, z_dim, hidden_dim)

    # ---- single forward (S = 1) ----------------------------------------------
    labels = jax.random.randint(k_label, (batch_size,), 0, num_classes)
    out, eps = generator_forward(labels, params, key=k_eps)
    out = jax.block_until_ready(out)
    eps = jax.block_until_ready(eps)

    assert out.shape == (batch_size, z_dim)
    assert eps.shape == (batch_size, z_dim)
    assert bool(jnp.all((eps >= 0.0) & (eps < 1.0))), "eps not in U[0,1)"

    ref = _reference(eps, labels, params, num_classes)
    max_err = float(jnp.max(jnp.abs(out - ref)))
    assert jnp.allclose(out, ref, atol=1e-2, rtol=1e-2), (
        f"mismatch vs reference (single step), max abs err = {max_err}")

    # ---- amortized path: S forwards in one pallas_call (weights resident) ----
    n_steps = 4
    labels_s = jax.random.randint(k_label_s, (n_steps, batch_size), 0, num_classes)
    out_s, eps_s = generator_forward_steps(labels_s, params, key=k_eps_s)
    out_s = jax.block_until_ready(out_s)

    assert out_s.shape == (n_steps, batch_size, z_dim)
    for s in range(n_steps):
        ref_s = _reference(eps_s[s], labels_s[s], params, num_classes)
        err_s = float(jnp.max(jnp.abs(out_s[s] - ref_s)))
        assert jnp.allclose(out_s[s], ref_s, atol=1e-2, rtol=1e-2), (
            f"mismatch vs reference at step {s}, max abs err = {err_s}")

    print("KERNEL_OK")
</pallas_src>

<mosaic_0001>
module attributes {stable_mosaic.version = 11 : i64} {
  func.func @_generator_kernel(%arg0: i32, %arg1: memref<1x8xi32, #tpu.memory_space<smem>>, %arg2: memref<1x8x32xf32, #tpu.memory_space<vmem>>, %arg3: memref<32x512xbf16, #tpu.memory_space<vmem>>, %arg4: memref<10x512xf32, #tpu.memory_space<vmem>>, %arg5: memref<3x512xf32, #tpu.memory_space<vmem>>, %arg6: memref<32x512xbf16, #tpu.memory_space<vmem>>, %arg7: memref<1x8x32xf32, #tpu.memory_space<vmem>>, %arg8: memref<8x512xf32, #tpu.memory_space<vmem>>) attributes {dimension_semantics = [#tpu.dimension_semantics<parallel>], iteration_bounds = array<i64: 1>, scalar_prefetch = 1 : i64, scratch_operands = 1 : i64, tpu.core_type = #tpu.core_type<tc>, window_params = [{transform_indices = @transform_0, window_bounds = array<i64: 1, 8, 32>}, {pipeline_mode = #tpu.pipeline_mode<synchronous>, transform_indices = @transform_1, window_bounds = array<i64: 32, 512>}, {pipeline_mode = #tpu.pipeline_mode<synchronous>, transform_indices = @transform_2, window_bounds = array<i64: 10, 512>}, {pipeline_mode = #tpu.pipeline_mode<synchronous>, transform_indices = @transform_3, window_bounds = array<i64: 3, 512>}, {pipeline_mode = #tpu.pipeline_mode<synchronous>, transform_indices = @transform_4, window_bounds = array<i64: 32, 512>}, {transform_indices = @transform_5, window_bounds = array<i64: 1, 8, 32>}]} {
    %0 = arith.index_cast %arg0 : i32 to index
    %c0 = arith.constant 0 : index
    %1 = memref.load %arg1[%0, %c0] : memref<1x8xi32, #tpu.memory_space<smem>>
    %2 = arith.index_cast %1 : i32 to index
    %c0_0 = arith.constant 0 : index
    %3 = vector.load %arg4[%2, %c0_0] : memref<10x512xf32, #tpu.memory_space<vmem>>, vector<1x512xf32>
    %c0_1 = arith.constant 0 : index
    %c0_2 = arith.constant 0 : index
    %4 = vector.load %arg8[%c0_1, %c0_2] : memref<8x512xf32, #tpu.memory_space<vmem>>, vector<1x512xf32>
    tpu.vector_store %arg8[%c0_1, %c0_2], %3 {strides = array<i32>} : memref<8x512xf32, #tpu.memory_space<vmem>>, vector<1x512xf32>,
    %5 = arith.index_cast %arg0 : i32 to index
    %c1 = arith.constant 1 : index
    %6 = memref.load %arg1[%5, %c1] : memref<1x8xi32, #tpu.memory_space<smem>>
    %7 = arith.index_cast %6 : i32 to index
    %c0_3 = arith.constant 0 : index
    %8 = vector.load %arg4[%7, %c0_3] : memref<10x512xf32, #tpu.memory_space<vmem>>, vector<1x512xf32>
    %c1_4 = arith.constant 1 : index
    %c0_5 = arith.constant 0 : index
    %9 = vector.load %arg8[%c1_4, %c0_5] : memref<8x512xf32, #tpu.memory_space<vmem>>, vector<1x512xf32>
    tpu.vector_store %arg8[%c1_4, %c0_5], %8 {strides = array<i32>} : memref<8x512xf32, #tpu.memory_space<vmem>>, vector<1x512xf32>,
    %10 = arith.index_cast %arg0 : i32 to index
    %c2 = arith.constant 2 : index
    %11 = memref.load %arg1[%10, %c2] : memref<1x8xi32, #tpu.memory_space<smem>>
    %12 = arith.index_cast %11 : i32 to index
    %c0_6 = arith.constant 0 : index
    %13 = vector.load %arg4[%12, %c0_6] : memref<10x512xf32, #tpu.memory_space<vmem>>, vector<1x512xf32>
    %c2_7 = arith.constant 2 : index
    %c0_8 = arith.constant 0 : index
    %14 = vector.load %arg8[%c2_7, %c0_8] : memref<8x512xf32, #tpu.memory_space<vmem>>, vector<1x512xf32>
    tpu.vector_store %arg8[%c2_7, %c0_8], %13 {strides = array<i32>} : memref<8x512xf32, #tpu.memory_space<vmem>>, vector<1x512xf32>,
    %15 = arith.index_cast %arg0 : i32 to index
    %c3 = arith.constant 3 : index
    %16 = memref.load %arg1[%15, %c3] : memref<1x8xi32, #tpu.memory_space<smem>>
    %17 = arith.index_cast %16 : i32 to index
    %c0_9 = arith.constant 0 : index
    %18 = vector.load %arg4[%17, %c0_9] : memref<10x512xf32, #tpu.memory_space<vmem>>, vector<1x512xf32>
    %c3_10 = arith.constant 3 : index
    %c0_11 = arith.constant 0 : index
    %19 = vector.load %arg8[%c3_10, %c0_11] : memref<8x512xf32, #tpu.memory_space<vmem>>, vector<1x512xf32>
    tpu.vector_store %arg8[%c3_10, %c0_11], %18 {strides = array<i32>} : memref<8x512xf32, #tpu.memory_space<vmem>>, vector<1x512xf32>,
    %20 = arith.index_cast %arg0 : i32 to index
    %c4 = arith.constant 4 : index
    %21 = memref.load %arg1[%20, %c4] : memref<1x8xi32, #tpu.memory_space<smem>>
    %22 = arith.index_cast %21 : i32 to index
    %c0_12 = arith.constant 0 : index
    %23 = vector.load %arg4[%22, %c0_12] : memref<10x512xf32, #tpu.memory_space<vmem>>, vector<1x512xf32>
    %c4_13 = arith.constant 4 : index
    %c0_14 = arith.constant 0 : index
    %24 = vector.load %arg8[%c4_13, %c0_14] : memref<8x512xf32, #tpu.memory_space<vmem>>, vector<1x512xf32>
    tpu.vector_store %arg8[%c4_13, %c0_14], %23 {strides = array<i32>} : memref<8x512xf32, #tpu.memory_space<vmem>>, vector<1x512xf32>,
    %25 = arith.index_cast %arg0 : i32 to index
    %c5 = arith.constant 5 : index
    %26 = memref.load %arg1[%25, %c5] : memref<1x8xi32, #tpu.memory_space<smem>>
    %27 = arith.index_cast %26 : i32 to index
    %c0_15 = arith.constant 0 : index
    %28 = vector.load %arg4[%27, %c0_15] : memref<10x512xf32, #tpu.memory_space<vmem>>, vector<1x512xf32>
    %c5_16 = arith.constant 5 : index
    %c0_17 = arith.constant 0 : index
    %29 = vector.load %arg8[%c5_16, %c0_17] : memref<8x512xf32, #tpu.memory_space<vmem>>, vector<1x512xf32>
    tpu.vector_store %arg8[%c5_16, %c0_17], %28 {strides = array<i32>} : memref<8x512xf32, #tpu.memory_space<vmem>>, vector<1x512xf32>,
    %30 = arith.index_cast %arg0 : i32 to index
    %c6 = arith.constant 6 : index
    %31 = memref.load %arg1[%30, %c6] : memref<1x8xi32, #tpu.memory_space<smem>>
    %32 = arith.index_cast %31 : i32 to index
    %c0_18 = arith.constant 0 : index
    %33 = vector.load %arg4[%32, %c0_18] : memref<10x512xf32, #tpu.memory_space<vmem>>, vector<1x512xf32>
    %c6_19 = arith.constant 6 : index
    %c0_20 = arith.constant 0 : index
    %34 = vector.load %arg8[%c6_19, %c0_20] : memref<8x512xf32, #tpu.memory_space<vmem>>, vector<1x512xf32>
    tpu.vector_store %arg8[%c6_19, %c0_20], %33 {strides = array<i32>} : memref<8x512xf32, #tpu.memory_space<vmem>>, vector<1x512xf32>,
    %35 = arith.index_cast %arg0 : i32 to index
    %c7 = arith.constant 7 : index
    %36 = memref.load %arg1[%35, %c7] : memref<1x8xi32, #tpu.memory_space<smem>>
    %37 = arith.index_cast %36 : i32 to index
    %c0_21 = arith.constant 0 : index
    %38 = vector.load %arg4[%37, %c0_21] : memref<10x512xf32, #tpu.memory_space<vmem>>, vector<1x512xf32>
    %c7_22 = arith.constant 7 : index
    %c0_23 = arith.constant 0 : index
    %39 = vector.load %arg8[%c7_22, %c0_23] : memref<8x512xf32, #tpu.memory_space<vmem>>, vector<1x512xf32>
    tpu.vector_store %arg8[%c7_22, %c0_23], %38 {strides = array<i32>} : memref<8x512xf32, #tpu.memory_space<vmem>>, vector<1x512xf32>,
    %c0_24 = arith.constant 0 : index
    %c0_25 = arith.constant 0 : index
    %c0_26 = arith.constant 0 : index
    %40 = vector.load %arg2[%c0_24, %c0_25, %c0_26] : memref<1x8x32xf32, #tpu.memory_space<vmem>>, vector<1x8x32xf32>
    %41 = vector.shape_cast %40 : vector<1x8x32xf32> to vector<8x32xf32>
    %42 = arith.truncf %41 : vector<8x32xf32> to vector<8x32xbf16>
    %c0_27 = arith.constant 0 : index
    %c0_28 = arith.constant 0 : index
    %43 = vector.load %arg3[%c0_27, %c0_28] : memref<32x512xbf16, #tpu.memory_space<vmem>>, vector<32x512xbf16>
    %cst = arith.constant dense<0.000000e+00> : vector<8x512xf32>
    %44 = tpu.matmul %42, %43, %cst {dimension_numbers = #tpu.dot_dimension_numbers<[1], [0], [0], [1], [0, 0, 1, 1], [], []>} : vector<8x32xbf16>, vector<32x512xbf16>, vector<8x512xf32> -> vector<8x512xf32>
    %c0_29 = arith.constant 0 : index
    %c0_30 = arith.constant 0 : index
    %45 = vector.load %arg8[%c0_29, %c0_30] : memref<8x512xf32, #tpu.memory_space<vmem>>, vector<8x512xf32>
    %46 = arith.addf %44, %45 : vector<8x512xf32>
    %c0_31 = arith.constant 0 : index
    %c0_32 = arith.constant 0 : index
    %47 = vector.load %arg5[%c0_31, %c0_32] : memref<3x512xf32, #tpu.memory_space<vmem>>, vector<3x512xf32>
    %48 = vector.extract_strided_slice %47 {offsets = [0, 0], sizes = [1, 512], strides = [1, 1]} : vector<3x512xf32> to vector<1x512xf32>
    %49 = vector.extract_strided_slice %47 {offsets = [1, 0], sizes = [1, 512], strides = [1, 1]} : vector<3x512xf32> to vector<1x512xf32>
    %50 = vector.extract_strided_slice %47 {offsets = [2, 0], sizes = [1, 32], strides = [1, 1]} : vector<3x512xf32> to vector<1x32xf32>
    %cst_33 = arith.constant dense<0.000000e+00> : vector<512xf32>
    %51 = vector.multi_reduction <add>, %46, %cst_33 [0] : vector<8x512xf32> to vector<512xf32>
    %52 = vector.shape_cast %51 : vector<512xf32> to vector<1x512xf32>
    %cst_34 = arith.constant 1.250000e-01 : f32
    %53 = vector.broadcast %cst_34 : f32 to vector<1x512xf32>
    %54 = arith.mulf %52, %53 : vector<1x512xf32>
    %55 = vector.broadcast %54 : vector<1x512xf32> to vector<8x512xf32>
    %56 = arith.subf %46, %55 : vector<8x512xf32>
    %57 = arith.mulf %56, %56 : vector<8x512xf32>
    %cst_35 = arith.constant dense<0.000000e+00> : vector<512xf32>
    %58 = vector.multi_reduction <add>, %57, %cst_35 [0] : vector<8x512xf32> to vector<512xf32>
    %59 = vector.shape_cast %58 : vector<512xf32> to vector<1x512xf32>
    %cst_36 = arith.constant 1.250000e-01 : f32
    %60 = vector.broadcast %cst_36 : f32 to vector<1x512xf32>
    %61 = arith.mulf %59, %60 : vector<1x512xf32>
    %cst_37 = arith.constant 9.99999974E-6 : f32
    %62 = vector.broadcast %cst_37 : f32 to vector<1x512xf32>
    %63 = arith.addf %61, %62 : vector<1x512xf32>
    %64 = math.rsqrt %63 : vector<1x512xf32>
    %65 = arith.mulf %48, %64 : vector<1x512xf32>
    %66 = vector.broadcast %65 : vector<1x512xf32> to vector<8x512xf32>
    %67 = arith.mulf %56, %66 : vector<8x512xf32>
    %68 = vector.broadcast %49 : vector<1x512xf32> to vector<8x512xf32>
    %69 = arith.addf %67, %68 : vector<8x512xf32>
    %cst_38 = arith.constant 0.000000e+00 : f32
    %70 = vector.broadcast %cst_38 : f32 to vector<8x512xf32>
    %71 = arith.maximumf %69, %70 : vector<8x512xf32>
    %72 = arith.truncf %71 : vector<8x512xf32> to vector<8x512xbf16>
    %c0_39 = arith.constant 0 : index
    %c0_40 = arith.constant 0 : index
    %73 = vector.load %arg6[%c0_39, %c0_40] : memref<32x512xbf16, #tpu.memory_space<vmem>>, vector<32x512xbf16>
    %cst_41 = arith.constant dense<0.000000e+00> : vector<8x32xf32>
    %74 = tpu.matmul %72, %73, %cst_41 {dimension_numbers = #tpu.dot_dimension_numbers<[1], [1], [0], [0], [0, 0, 1, 0], [], []>} : vector<8x512xbf16>, vector<32x512xbf16>, vector<8x32xf32> -> vector<8x32xf32>
    %75 = vector.broadcast %50 : vector<1x32xf32> to vector<8x32xf32>
    %76 = arith.addf %74, %75 : vector<8x32xf32>
    %cst_42 = arith.constant 0.000000e+00 : f32
    %77 = vector.broadcast %cst_42 : f32 to vector<8x32xf32>
    %78 = arith.cmpf oge, %76, %77 : vector<8x32xf32>
    %cst_43 = arith.constant 0.00999999977 : f32
    %79 = vector.broadcast %cst_43 : f32 to vector<8x32xf32>
    %80 = arith.mulf %79, %76 : vector<8x32xf32>
    %81 = arith.select %78, %76, %80 : vector<8x32xi1>, vector<8x32xf32>
    %c0_44 = arith.constant 0 : index
    %c0_45 = arith.constant 0 : index
    %c0_46 = arith.constant 0 : index
    %82 = vector.load %arg7[%c0_44, %c0_45, %c0_46] : memref<1x8x32xf32, #tpu.memory_space<vmem>>, vector<1x8x32xf32>
    %83 = vector.shape_cast %82 : vector<1x8x32xf32> to vector<8x32xf32>
    %84 = vector.shape_cast %81 : vector<8x32xf32> to vector<1x8x32xf32>
    tpu.vector_store %arg7[%c0_44, %c0_45, %c0_46], %84 {strides = array<i32>} : memref<1x8x32xf32, #tpu.memory_space<vmem>>, vector<1x8x32xf32>,
    return
  }
  func.func @transform_0(%arg0: i32, %arg1: memref<1x8xi32, #tpu.memory_space<smem>>) -> (i32, i32, i32) {
    %c0_i32 = arith.constant 0 : i32
    %c0_i32_0 = arith.constant 0 : i32
    %c0_i32_1 = arith.constant 0 : i32
    return %arg0, %c0_i32, %c0_i32_0 : i32, i32, i32
  }
  func.func @transform_1(%arg0: i32, %arg1: memref<1x8xi32, #tpu.memory_space<smem>>) -> (i32, i32) {
    %c0_i32 = arith.constant 0 : i32
    %c0_i32_0 = arith.constant 0 : i32
    %c0_i32_1 = arith.constant 0 : i32
    return %c0_i32, %c0_i32_0 : i32, i32
  }
  func.func @transform_2(%arg0: i32, %arg1: memref<1x8xi32, #tpu.memory_space<smem>>) -> (i32, i32) {
    %c0_i32 = arith.constant 0 : i32
    %c0_i32_0 = arith.constant 0 : i32
    %c0_i32_1 = arith.constant 0 : i32
    return %c0_i32, %c0_i32_0 : i32, i32
  }
  func.func @transform_3(%arg0: i32, %arg1: memref<1x8xi32, #tpu.memory_space<smem>>) -> (i32, i32) {
    %c0_i32 = arith.constant 0 : i32
    %c0_i32_0 = arith.constant 0 : i32
    %c0_i32_1 = arith.constant 0 : i32
    return %c0_i32, %c0_i32_0 : i32, i32
  }
  func.func @transform_4(%arg0: i32, %arg1: memref<1x8xi32, #tpu.memory_space<smem>>) -> (i32, i32) {
    %c0_i32 = arith.constant 0 : i32
    %c0_i32_0 = arith.constant 0 : i32
    %c0_i32_1 = arith.constant 0 : i32
    return %c0_i32, %c0_i32_0 : i32, i32
  }
  func.func @transform_5(%arg0: i32, %arg1: memref<1x8xi32, #tpu.memory_space<smem>>) -> (i32, i32, i32) {
    %c0_i32 = arith.constant 0 : i32
    %c0_i32_0 = arith.constant 0 : i32
    %c0_i32_1 = arith.constant 0 : i32
    return %arg0, %c0_i32, %c0_i32_0 : i32, i32, i32
  }
}

</mosaic_0001>

<bundles_post_ra>
// kernel: generator_pallas.1
= control target key start
LH: loop header
LB: loop body
LE: loop exit
PB: predicated region body
PF: predicated region fallthrough
CT: control target
= control target key end

     0   :  { %s1152_s0 = inlined_call_operand.hbm [shape: s32[1,8], index: 0, kind: input, shape index: {}]   ;;  %s1153_s1 = inlined_call_operand.hbm [shape: f32[1,8,32], index: 1, kind: input, shape index: {}]   ;;  %s1154_s2 = inlined_call_operand.hbm [shape: bf16[32,512], index: 2, kind: input, shape index: {}]   ;;  %s1155_s3 = inlined_call_operand.hbm [shape: f32[10,512], index: 3, kind: input, shape index: {}]   ;;  %s1156_s4 = inlined_call_operand.hbm [shape: f32[3,512], index: 4, kind: input, shape index: {}]   ;;  %s1157_s5 = inlined_call_operand.hbm [shape: bf16[32,512], index: 5, kind: input, shape index: {}]   ;;  %s1158_s6 = inlined_call_operand.hbm [shape: f32[1,8,32], index: 6, kind: output, shape index: {}]  }
   0x1   :  { %s794_s23 = scalar_lea.hbm %s1152_s0, 16 }
   0x2   :  { %p795_p0 = scmp.ne.s32.totalorder %s1152_s0, %s794_s23  ;;  %p798_p1 = scmp.lt.u32.totalorder %s794_s23, %s1152_s0 }
   0x4   :  { %p800_p2 = pnand %p798_p1, %p795_p0 }
   0x6   :  { %803 = shalt.err (!%p800_p2)  }
   0x7   :  { %s946_s28 = smov [#allocation4]  }
   0x8   :  { %12 = dma.hbm_to_smem %s1152_s0, 16, %s946_s28, [#allocation3] }
   0x9   :  { %936 = dma.done.wait [#allocation3], 16 }
   0xa   :  { %937 = vsyncadd [#allocation3], 4294967280 }
   0xb   :  { %14 = sfence }
   0xc   :  { %15 = vsyncpa [#allocation6], 0 }
   0xd   :  { %16 = vsyncpa [#allocation9], 0 }
   0xe   :  { %17 = vsyncpa [#allocation12], 0 }
   0xf   :  { %18 = vsyncpa [#allocation7], 0  ;;  %s947_s7 = smov [#allocation8]   ;;  %s804_s11 = scalar_lea.hbm %s1154_s2, 1024 }
  0x10   :  { %s34_s8 = sshll.u32 %s947_s7, 4  ;;  %p805_p3 = scmp.ne.s32.totalorder %s1154_s2, %s804_s11  ;;  %s35_s8 = int_to_ptr.vmem [resolvable:$true] %s34_s8 }
  0x11   :  { %p808_p4 = scmp.lt.u32.totalorder %s804_s11, %s1154_s2 }
  0x13   :  { %p810_p5 = pnand %p808_p4, %p805_p3 }
  0x15   :  { %813 = shalt.err (!%p810_p5)
}
  0x16   :  { %s814_s15 = scalar_lea.vmem %s35_s8, 1024  ;;  %p819_p7 = scmp.lt.s32.totalorder %s35_s8, %s35_s8 }
  0x17   :  { %p815_p6 = scmp.ne.s32.totalorder %s35_s8, %s814_s15  ;;  %p820_p8 = scmp.lt.s32.totalorder %s814_s15, %s814_s15 }
  0x19   :  { %p821_p9 = por %p820_p8, %p819_p7 }
  0x1b   :  { %p822_p10 = pnand %p821_p9, %p815_p6 }
  0x1d   :  { %825 = shalt.err (!%p822_p10)
}
  0x1e   :  { %s948_s16 = smov 256   ;;  %s949_s17 = smov 16  }
  0x1f   :  { %40 = dma.hbm_to_vmem [thread:$0]  %s1154_s2, 1024, %s35_s8, [#allocation9], %s948_s16, %s948_s16, %s949_s17  }
  0x20   :  { %s950_s20 = smov [#allocation11]   ;;  %s951_s22 = smov [#allocation5]  }
  0x21   :  { %s59_s21 = sshll.u32 %s950_s20, 4  ;;  %s25_s23 = sshll.u32 %s951_s22, 4  ;;  %s60_s21 = int_to_ptr.vmem [resolvable:$true] %s59_s21  ;;  %s26_s23 = int_to_ptr.vmem [resolvable:$true] %s25_s23 }
  0x22   :  { %s826_s26 = scalar_lea.hbm %s1156_s4, 256 }
  0x23   :  { %p827_p11 = scmp.ne.s32.totalorder %s1156_s4, %s826_s26  ;;  %p830_p12 = scmp.lt.u32.totalorder %s826_s26, %s1156_s4 }
  0x25   :  { %p832_p13 = pnand %p830_p12, %p827_p11 }
  0x27   :  { %835 = shalt.err (!%p832_p13)
}
  0x28   :  { %s836_s2 = scalar_lea.vmem %s60_s21, 256  ;;  %p841_p1 = scmp.lt.s32.totalorder %s60_s21, %s60_s21 }
  0x29   :  { %p837_p0 = scmp.ne.s32.totalorder %s60_s21, %s836_s2  ;;  %p842_p2 = scmp.lt.s32.totalorder %s836_s2, %s836_s2 }
  0x2b   :  { %p843_p3 = por %p842_p2, %p841_p1 }
  0x2d   :  { %p844_p4 = pnand %p843_p3, %p837_p0 }
  0x2f   :  { %847 = shalt.err (!%p844_p4)
}
  0x30   :  { %62 = dma.hbm_to_vmem [thread:$0]  %s1156_s4, 256, %s60_s21, [#allocation12]  }
  0x31   :  { %s848_s11 = scalar_lea.hbm %s1153_s1, 128 }
  0x32   :  { %p849_p5 = scmp.ne.s32.totalorder %s1153_s1, %s848_s11  ;;  %p852_p6 = scmp.lt.u32.totalorder %s848_s11, %s1153_s1 }
  0x34   :  { %p854_p7 = pnand %p852_p6, %p849_p5 }
  0x36   :  { %857 = shalt.err (!%p854_p7)
}
  0x37   :  { %s858_s15 = scalar_lea.vmem %s26_s23, 128  ;;  %p863_p9 = scmp.lt.s32.totalorder %s26_s23, %s26_s23 }
  0x38   :  { %p859_p8 = scmp.ne.s32.totalorder %s26_s23, %s858_s15  ;;  %p864_p10 = scmp.lt.s32.totalorder %s858_s15, %s858_s15 }
  0x3a   :  { %p865_p11 = por %p864_p10, %p863_p9 }
  0x3c   :  { %p866_p12 = pnand %p865_p11, %p859_p8 }
  0x3e   :  { %869 = shalt.err (!%p866_p12)
}
  0x3f   :  { %28 = dma.hbm_to_vmem [thread:$0]  %s1153_s1, 128, %s26_s23, [#allocation6]  }
  0x40   :  { %s952_s19 = smov [#allocation10]   ;;  %s870_s24 = scalar_lea.hbm %s1155_s3, 1024 }
  0x41   :  { %s46_s20 = sshll.u32 %s952_s19, 4  ;;  %p871_p13 = scmp.ne.s32.totalorder %s1155_s3, %s870_s24  ;;  %s47_s20 = int_to_ptr.vmem [resolvable:$true] %s46_s20 }
  0x42   :  { %p874_p0 = scmp.lt.u32.totalorder %s870_s24, %s1155_s3 }
  0x44   :  { %p876_p1 = pnand %p874_p0, %p871_p13 }
  0x46   :  { %879 = shalt.err (!%p876_p1)
}
  0x47   :  { %s880_s29 = scalar_lea.vmem %s47_s20, 1024  ;;  %p885_p3 = scmp.lt.s32.totalorder %s47_s20, %s47_s20 }
  0x48   :  { %p881_p2 = scmp.ne.s32.totalorder %s47_s20, %s880_s29  ;;  %p886_p4 = scmp.lt.s32.totalorder %s880_s29, %s880_s29 }
  0x4a   :  { %p887_p5 = por %p886_p4, %p885_p3 }
  0x4c   :  { %p888_p6 = pnand %p887_p5, %p881_p2 }
  0x4e   :  { %891 = shalt.err (!%p888_p6)
}
  0x4f   :  { %s953_s1 = smov 512   ;;  %s954_s23 = smov 32  }
  0x50   :  { %52 = dma.hbm_to_vmem [thread:$0]  %s1155_s3, 1024, %s47_s20, [#allocation9], %s953_s1, %s953_s1, %s954_s23  }
  0x51   :  { %s955_s7 = smov [#allocation13]   ;;  %s892_s11 = scalar_lea.hbm %s1157_s5, 1024 }
  0x52   :  { %s68_s8 = sshll.u32 %s955_s7, 4  ;;  %p893_p7 = scmp.ne.s32.totalorder %s1157_s5, %s892_s11  ;;  %s69_s8 = int_to_ptr.vmem [resolvable:$true] %s68_s8 }
  0x53   :  { %p896_p8 = scmp.lt.u32.totalorder %s892_s11, %s1157_s5 }
  0x55   :  { %p898_p9 = pnand %p896_p8, %p893_p7 }
  0x57   :  { %901 = shalt.err (!%p898_p9)
}
  0x58   :  { %s902_s15 = scalar_lea.vmem %s69_s8, 1024  ;;  %p907_p11 = scmp.lt.s32.totalorder %s69_s8, %s69_s8 }
  0x59   :  { %p903_p10 = scmp.ne.s32.totalorder %s69_s8, %s902_s15  ;;  %p908_p12 = scmp.lt.s32.totalorder %s902_s15, %s902_s15 }
  0x5b   :  { %p909_p13 = por %p908_p12, %p907_p11 }
  0x5d   :  { %p910_p0 = pnand %p909_p13, %p903_p10 }
  0x5f   :  { %913 = shalt.err (!%p910_p0)
}
  0x60   :  { %74 = dma.hbm_to_vmem [thread:$0]  %s1157_s5, 1024, %s69_s8, [#allocation12], %s948_s16, %s948_s16, %s949_s17  }
  0x61   :  { %938 = dma.done.wait [#allocation6], 128  }
  0x62   :  { %939 = vsyncadd [#allocation6], 4294967168 }
  0x63   :  { %940 = dma.done.wait [#allocation9], 2048  }
  0x64   :  { %941 = vsyncadd [#allocation9], 4294965248 }
  0x65   :  { %942 = dma.done.wait [#allocation12], 1280  }
  0x66   :  { %943 = vsyncadd [#allocation12], 4294966016  ;;  %v956_v0 = vmov 0   ;;  %s92_s18 = sld [smem:[#allocation4]]  ;;  %s701_s19 = sld [smem:[#allocation4 + $0x1]]  ;;  %v102_v1 = vlaneseq  ;;  %v206_v11 = vld [vmem:[#allocation5] sm:$0xff] }
  0x67   :  { %296 = vmatprep.mubr.bf16.mxu0 %v956_v0  ;;  %337 = vmatprep.mubr.bf16.mxu1 %v956_v0  ;;  %s1071_s20 = sld [smem:[#allocation4 + $0x2]]  ;;  %s1073_s21 = sld [smem:[#allocation4 + $0x3]]  ;;  %v762_v3 = vld [vmem:[#allocation8 + $0x4] ss:$16 sps:$4 sm:$0xff]   ;;  %v764_v4 = vld [vmem:[#allocation8 + $0xc] ss:$16 sps:$4 sm:$0xff]   ;;  %v207_v13 = vpack.c.bf16 %v206_v11, %v206_v11 }
  0x68   :  { %s1075_s22 = sld [smem:[#allocation4 + $0x4]]  ;;  %s1077_s24 = sld [smem:[#allocation4 + $0x5]]  ;;  %vm1080_vm0 = vcmp.lt.s32.totalorder %v102_v1, 512  ;;  %264 = vmatprep.subr.bf16.mxu0 %v762_v3  ;;  %v766_v5 = vld [vmem:[#allocation8] ss:$16 sps:$4 sm:$0xff]   ;;  %305 = vmatprep.subr.bf16.mxu1 %v764_v4  ;;  %vm260_vm1 = vcmask 261120  }
  0x69   :  { %s1084_s5 = sld [smem:[#allocation4 + $0x6]]  ;;  %s1086_s16 = sld [smem:[#allocation4 + $0x7]]  ;;  %v767_v6 = vld [vmem:[#allocation8 + $0x8] ss:$16 sps:$4 sm:$0xff]   ;;  %v768_v7 = vld [vmem:[#allocation8 + $0x24] ss:$16 sps:$4 sm:$0xff]   ;;  %265 = vmatpush1.bf16.msra.mxu0 %v766_v5 }
  0x6a   :  { %306 = vmatpush1.bf16.msra.mxu1 %v767_v6  ;;  %v770_v8 = vld [vmem:[#allocation8 + $0x2c] ss:$16 sps:$4 sm:$0xff]   ;;  %v772_v9 = vld [vmem:[#allocation8 + $0x20] ss:$16 sps:$4 sm:$0xff]   ;;  %266 = vmatprep.subr.bf16.mxu0 %v768_v7  ;;  %v773_v10 = vld [vmem:[#allocation8 + $0x28] ss:$16 sps:$4 sm:$0xff]  }
  0x6b   :  { %307 = vmatprep.subr.bf16.mxu1 %v770_v8  ;;  %v774_v21 = vld [vmem:[#allocation13] ss:$16 sps:$4 sm:$0xff]   ;;  %v776_v22 = vld [vmem:[#allocation13 + $0x4] ss:$16 sps:$4 sm:$0xff]   ;;  %v777_v23 = vld [vmem:[#allocation13 + $0x8] ss:$16 sps:$4 sm:$0xff]  }
  0x6c   :  { %s93_s17 = sshra.s32 %s92_s18, 3  ;;  %s96_s25 = sand.u32 7, %s92_s18  ;;  %v779_v24 = vld [vmem:[#allocation13 + $0xc] ss:$16 sps:$4 sm:$0xff]   ;;  %v782_v25 = vld [vmem:[#allocation13 + $0x24] ss:$16 sps:$4 sm:$0xff]  }
  0x6d   :  { %s740_s26 = sshll.u32 %s93_s17, 5  ;;  %s110_s27 = sshra.s32 %s701_s19, 3  ;;  %267 = vmatpush1.bf16.msra.mxu0 %v772_v9  ;;  %v785_v26 = vld [vmem:[#allocation13 + $0x2c] ss:$16 sps:$4 sm:$0xff]   ;;  %v780_v27 = vld [vmem:[#allocation13 + $0x20] ss:$16 sps:$4 sm:$0xff]  }
  0x6e   :  { %s99_s28 = sadd.s32 %s740_s26, %s96_s25  ;;  %s113_s29 = sand.u32 7, %s701_s19  ;;  %308 = vmatpush1.bf16.msra.mxu1 %v773_v10  ;;  %614 = vmatprep.subr.bf16.mxu0 %v779_v24  ;;  %v783_v28 = vld [vmem:[#allocation13 + $0x28] ss:$16 sps:$4 sm:$0xff]  }
  0x6f   :  { %s741_s1 = sshll.u32 %s110_s27, 5  ;;  %s124_s30 = sshra.s32 %s1071_s20, 3  ;;  %574 = vmatprep.subr.bf16.mxu1 %v776_v22 }
  0x70   :  { %s116_s23 = sadd.s32 %s741_s1, %s113_s29  ;;  %s100_s2 = scalar_lea.vmem [#allocation10], %s99_s28  ;;  %730 = vmatmul.mubr.msk.bf16.vlgmr.msra.gmra.mrb[0].mxu0 %vm260_vm1, %v207_v13 }
  0x71   :  { %v101_v12 = vld [vmem:[%s100_s2] ss:$8 sm:$0xf]  ;;  %s127_s7 = sand.u32 7, %s1071_s20  ;;  %s117_s8 = scalar_lea.vmem [#allocation10], %s116_s23  ;;  %731 = vmatmul.mubr.msk.bf16.vlgmr.msra.gmra.mrb[0].mxu1 %vm260_vm1, %v207_v13 }
  0x72   :  { %106 = vst.msk [vmem:[#allocation2] ss:$8 sm:$0xf] %vm1080_vm0, %v101_v12  ;;  %v118_v14 = vld [vmem:[%s117_s8] ss:$8 sm:$0xf] }
  0x73   :  { %s742_s9 = sshll.u32 %s124_s30, 5  ;;  %s138_s10 = sshra.s32 %s1073_s21, 3  ;;  %120 = vst.msk [vmem:[#allocation2 + $0x1] ss:$8 sm:$0xf] %vm1080_vm0, %v118_v14 }
  0x74   :  { %s130_s11 = sadd.s32 %s742_s9, %s127_s7  ;;  %s141_s12 = sand.u32 7, %s1073_s21 }
  0x75   :  { %s743_s13 = sshll.u32 %s138_s10, 5  ;;  %s131_s14 = scalar_lea.vmem [#allocation10], %s130_s11 }
  0x76   :  { %v132_v15 = vld [vmem:[%s131_s14] ss:$8 sm:$0xf]  ;;  %s144_s0 = sadd.s32 %s743_s13, %s141_s12  ;;  %s152_s15 = sshra.s32 %s1075_s22, 3  ;;  %615 = vmatpush1.bf16.xpose.msra.mxu0 %v777_v23 }
  0x77   :  { %134 = vst.msk [vmem:[#allocation2 + $0x2] ss:$8 sm:$0xf] %vm1080_vm0, %v132_v15  ;;  %s155_s3 = sand.u32 7, %s1075_s22  ;;  %s145_s4 = scalar_lea.vmem [#allocation10], %s144_s0  ;;  %575 = vmatpush1.bf16.xpose.msra.mxu1 %v774_v21  ;;  %616 = vmatprep.subr.bf16.mxu0 %v785_v26 }
  0x78   :  { %v146_v16 = vld [vmem:[%s145_s4] ss:$8 sm:$0xf]  ;;  %s744_s18 = sshll.u32 %s152_s15, 5  ;;  %s166_s19 = sshra.s32 %s1077_s24, 3  ;;  %576 = vmatprep.subr.bf16.mxu1 %v782_v25 }
  0x79   :  { %148 = vst.msk [vmem:[#allocation2 + $0x3] ss:$8 sm:$0xf] %vm1080_vm0, %v146_v16  ;;  %s158_s20 = sadd.s32 %s744_s18, %s155_s3  ;;  %s169_s21 = sand.u32 7, %s1077_s24 }
  0x7a   :  { %s745_s17 = sshll.u32 %s166_s19, 5  ;;  %s159_s25 = scalar_lea.vmem [#allocation10], %s158_s20 }
  0x7b   :  { %v160_v17 = vld [vmem:[%s159_s25] ss:$8 sm:$0xf]  ;;  %s172_s26 = sadd.s32 %s745_s17, %s169_s21  ;;  %s180_s27 = sshra.s32 %s1084_s5, 3 }
  0x7c   :  { %162 = vst.msk [vmem:[#allocation2 + $0x4] ss:$8 sm:$0xf] %vm1080_vm0, %v160_v17  ;;  %s183_s22 = sand.u32 7, %s1084_s5  ;;  %s173_s28 = scalar_lea.vmem [#allocation10], %s172_s26 }
  0x7d   :  { %v174_v18 = vld [vmem:[%s173_s28] ss:$8 sm:$0xf]  ;;  %s746_s29 = sshll.u32 %s180_s27, 5  ;;  %s194_s1 = sshra.s32 %s1086_s16, 3 }
  0x7e   :  { %176 = vst.msk [vmem:[#allocation2 + $0x5] ss:$8 sm:$0xf] %vm1080_vm0, %v174_v18  ;;  %s186_s23 = sadd.s32 %s746_s29, %s183_s22  ;;  %s197_s30 = sand.u32 7, %s1086_s16  ;;  %617 = vmatpush1.bf16.xpose.msra.mxu0 %v783_v28 }
  0x7f   :  { %s747_s2 = sshll.u32 %s194_s1, 5  ;;  %s187_s24 = scalar_lea.vmem [#allocation10], %s186_s23  ;;  %577 = vmatpush1.bf16.xpose.msra.mxu1 %v780_v27 }
  0x80   :  { %v188_v19 = vld [vmem:[%s187_s24] ss:$8 sm:$0xf]  ;;  %s200_s7 = sadd.s32 %s747_s2, %s197_s30  ;;  %s957_s5 = smov [#allocation14]  }
  0x81   :  { %190 = vst.msk [vmem:[#allocation2 + $0x6] ss:$8 sm:$0xf] %vm1080_vm0, %v188_v19  ;;  %s201_s8 = scalar_lea.vmem [#allocation10], %s200_s7  ;;  %s664_s16 = sshll.u32 %s957_s5, 4  ;;  %s665_s16 = int_to_ptr.vmem [resolvable:$true] %s664_s16 }
  0x82   :  { %v202_v20 = vld [vmem:[%s201_s8] ss:$8 sm:$0xf]  ;;  %s914_s9 = scalar_lea.vmem %s665_s16, 128  ;;  %p919_p2 = scmp.lt.s32.totalorder %s665_s16, %s665_s16 }
  0x83   :  { %204 = vst.msk [vmem:[#allocation2 + $0x7] ss:$8 sm:$0xf] %vm1080_vm0, %v202_v20  ;;  %p915_p1 = scmp.ne.s32.totalorder %s665_s16, %s914_s9  ;;  %p920_p3 = scmp.lt.s32.totalorder %s914_s9, %s914_s9 }
  0x85   :  { %p921_p4 = por %p920_p3, %p919_p2 }
  0x87   :  { %p922_p5 = pnand %p921_p4, %p915_p1 }
  0x8a   :  { %v216_v29 = vld [vmem:[#allocation2] sm:$0xff]  ;;  %v218_v30 = vld [vmem:[#allocation2 + $0x10] sm:$0xff]  ;;  %v217_v31 = vld [vmem:[#allocation2 + $0x8] sm:$0xff] }
  0x8b   :  { %v219_v32 = vld [vmem:[#allocation2 + $0x18] sm:$0xff] }
 0x143   :  { %v298_v33 = vpop.f32.mrb[0].mxu0 }
 0x144   :  { %v339_v34 = vpop.f32.mrb[0].mxu1  ;;  %v299_v35 = vadd.f32 %v298_v33, %v216_v29  ;;  %v300_v37 = vpop.f32.mrb[1].mxu0 }
 0x145   :  { %v340_v36 = vadd.f32 %v339_v34, %v218_v30  ;;  %v341_v38 = vpop.f32.mrb[1].mxu1  ;;  %v301_v39 = vadd.f32 %v300_v37, %v217_v31  ;;  %v302_v41 = vpop.f32.mrb[2].mxu0 }
 0x146   :  { %v342_v40 = vadd.f32 %v341_v38, %v219_v32  ;;  %v343_v42 = vpop.f32.mrb[2].mxu1  ;;  %v348_v43 = vrot.slane %v299_v35, 4  ;;  %v303_v45 = vpop.f32.mrb[3].mxu0 }
 0x147   :  { %v360_v44 = vrot.slane %v340_v36, 4  ;;  %v344_v46 = vpop.f32.mrb[3].mxu1  ;;  %v354_v47 = vrot.slane %v301_v39, 4 }
 0x148   :  { %v366_v48 = vrot.slane %v342_v40, 4  ;;  %v349_v49 = vadd.f32 %v348_v43, %v299_v35 }
 0x149   :  { %v361_v50 = vadd.f32 %v360_v44, %v340_v36  ;;  %v355_v51 = vadd.f32 %v354_v47, %v301_v39 }
 0x14a   :  { %v367_v52 = vadd.f32 %v366_v48, %v342_v40  ;;  %v350_v53 = vrot.slane %v349_v49, 2 }
 0x14b   :  { %v362_v54 = vrot.slane %v361_v50, 2  ;;  %v356_v55 = vrot.slane %v355_v51, 2 }
 0x14c   :  { %v368_v56 = vrot.slane %v367_v52, 2  ;;  %v351_v57 = vadd.f32 %v350_v53, %v349_v49 }
 0x14d   :  { %v363_v58 = vadd.f32 %v362_v54, %v361_v50  ;;  %v357_v59 = vadd.f32 %v356_v55, %v355_v51  ;;  %v433_v50 = vshrl.u32 %v102_v1, 7 }
 0x14e   :  { %v369_v60 = vadd.f32 %v368_v56, %v367_v52  ;;  %v352_v61 = vrot.slane %v351_v57, 1  ;;  %v346_v56 = vld [vmem:[#allocation11] sm:$0x77] }
 0x14f   :  { %v364_v62 = vrot.slane %v363_v58, 1  ;;  %v358_v63 = vrot.slane %v357_v59, 1  ;;  %v476_v53 = vsub.s32 1, %v433_v50  ;;  %v480_v54 = vsub.s32 5, %v433_v50 }
 0x150   :  { %v370_v0 = vrot.slane %v369_v60, 1  ;;  %v353_v2 = vadd.f32 %v352_v61, %v351_v57  ;;  %v347_v61 = vld [vmem:[#allocation11 + $0x8] sm:$0x77] }
 0x151   :  { %v365_v3 = vadd.f32 %v364_v62, %v363_v58  ;;  %v359_v4 = vadd.f32 %v358_v63, %v357_v59  ;;  %v434_v59 = vsub.s32 0, %v433_v50 }
 0x152   :  { %v371_v5 = vadd.f32 %v370_v0, %v369_v60  ;;  %v372_v6 = vmul.f32 0.125, %v353_v2  ;;  %v438_v60 = vsub.s32 4, %v433_v50  ;;  %v481_v0 = vrot.slane %v346_v56, %v480_v54 }
 0x153   :  { %v374_v7 = vmul.f32 0.125, %v365_v3  ;;  %v373_v8 = vmul.f32 0.125, %v359_v4  ;;  %v477_v2 = vrot.slane %v346_v56, %v476_v53  ;;  %v489_v4 = vrot.slane %v347_v61, %v480_v54 }
 0x154   :  { %v375_v9 = vmul.f32 0.125, %v371_v5  ;;  %v1118_v10 = vsub.f32 %v299_v35, %v372_v6  ;;  %v485_v5 = vrot.slane %v347_v61, %v476_v53 }
 0x155   :  { %v1120_v11 = vsub.f32 %v340_v36, %v374_v7  ;;  %v1122_v12 = vsub.f32 %v301_v39, %v373_v8 }
 0x156   :  { %v1124_v13 = vsub.f32 %v342_v40, %v375_v9  ;;  %v380_v14 = vmul.f32 %v1118_v10, %v1118_v10 }
 0x157   :  { %v382_v15 = vmul.f32 %v1120_v11, %v1120_v11  ;;  %v381_v16 = vmul.f32 %v1122_v12, %v1122_v12 }
 0x158   :  { %v383_v17 = vmul.f32 %v1124_v13, %v1124_v13  ;;  %v384_v18 = vrot.slane %v380_v14, 4 }
 0x159   :  { %v396_v19 = vrot.slane %v382_v15, 4  ;;  %v390_v20 = vrot.slane %v381_v16, 4 }
 0x15a   :  { %v402_v21 = vrot.slane %v383_v17, 4  ;;  %v385_v22 = vadd.f32 %v384_v18, %v380_v14  ;;  %v501_v14 = vrot.slane %v481_v0, %v476_v53  ;;  %v509_v18 = vrot.slane %v489_v4, %v476_v53 }
 0x15b   :  { %v397_v23 = vadd.f32 %v396_v19, %v382_v15  ;;  %v391_v24 = vadd.f32 %v390_v20, %v381_v16  ;;  %v497_v16 = vrot.slane %v477_v2, %v476_v53  ;;  %v505_v20 = vrot.slane %v485_v5, %v476_v53 }
 0x15c   :  { %v403_v25 = vadd.f32 %v402_v21, %v383_v17  ;;  %v386_v26 = vrot.slane %v385_v22, 2 }
 0x15d   :  { %v398_v27 = vrot.slane %v397_v23, 2  ;;  %v392_v28 = vrot.slane %v391_v24, 2 }
 0x15e   :  { %v404_v29 = vrot.slane %v403_v25, 2  ;;  %v387_v30 = vadd.f32 %v386_v26, %v385_v22 }
 0x15f   :  { %v399_v31 = vadd.f32 %v398_v27, %v397_v23  ;;  %v393_v32 = vadd.f32 %v392_v28, %v391_v24 }
 0x160   :  { %v405_v33 = vadd.f32 %v404_v29, %v403_v25  ;;  %v388_v34 = vrot.slane %v387_v30, 1 }
 0x161   :  { %v400_v35 = vrot.slane %v399_v31, 1  ;;  %v394_v36 = vrot.slane %v393_v32, 1 }
 0x162   :  { %v406_v37 = vrot.slane %v405_v33, 1  ;;  %v389_v38 = vadd.f32 %v388_v34, %v387_v30 }
 0x163   :  { %v401_v39 = vadd.f32 %v400_v35, %v399_v31  ;;  %v395_v40 = vadd.f32 %v394_v36, %v393_v32 }
 0x164   :  { %v407_v41 = vadd.f32 %v406_v37, %v405_v33  ;;  %v408_v42 = vmul.f32 0.125, %v389_v38 }
 0x165   :  { %v410_v43 = vmul.f32 0.125, %v401_v39  ;;  %v409_v44 = vmul.f32 0.125, %v395_v40 }
 0x166   :  { %v411_v45 = vmul.f32 0.125, %v407_v41  ;;  %v412_v46 = vadd.f32 1e-05, %v408_v42 }
 0x167   :  { %v414_v47 = vadd.f32 1e-05, %v410_v43  ;;  %v413_v48 = vadd.f32 1e-05, %v409_v44 }
 0x168   :  { %v415_v49 = vadd.f32 1e-05, %v411_v45  ;;  %786 = vrsqrt.f32 %v412_v46 }
 0x169   :  { %788 = vrsqrt.f32 %v414_v47 }
 0x16a   :  { %790 = vrsqrt.f32 %v413_v48 }
 0x16b   :  { %792 = vrsqrt.f32 %v415_v49 }
 0x172   :  { %v787_v51 = vpop.eup %786 }
 0x173   :  { %v789_v52 = vpop.eup %788 }
 0x174   :  { %v791_v55 = vpop.eup %790 }
 0x175   :  { %v793_v57 = vpop.eup %792  ;;  %v424_v58 = vcombine.low %v787_v51, %v791_v55 }
 0x176   :  { %v425_v62 = vcombine.low %v789_v52, %v793_v57 }
 0x177   :  { %v428_v63 = vmul.f32 %v424_v58, %v346_v56 }
 0x178   :  { %v429_v3 = vmul.f32 %v425_v62, %v347_v61 }
 0x179   :  { %v439_v6 = vrot.slane %v428_v63, %v438_v60  ;;  %v435_v1 = vrot.slane %v428_v63, %v434_v59 }
 0x17a   :  { %v447_v7 = vrot.slane %v429_v3, %v438_v60  ;;  %v443_v8 = vrot.slane %v429_v3, %v434_v59 }
 0x17b   :  { %v459_v9 = vrot.slane %v439_v6, %v434_v59  ;;  %v455_v15 = vrot.slane %v435_v1, %v434_v59 }
 0x17c   :  { %v467_v17 = vrot.slane %v447_v7, %v434_v59  ;;  %v463_v19 = vrot.slane %v443_v8, %v434_v59 }
 0x17d   :  { %v469_v21 = vmul.f32 %v459_v9, %v1122_v12  ;;  %v468_v22 = vmul.f32 %v455_v15, %v1118_v10  ;;  %v532_v10 = vsub.s32 2, %v433_v50 }
 0x17e   :  { %v471_v23 = vmul.f32 %v467_v17, %v1124_v13  ;;  %v470_v24 = vmul.f32 %v463_v19, %v1120_v11 }
 0x17f   :  { %v511_v25 = vadd.f32 %v501_v14, %v469_v21  ;;  %v510_v26 = vadd.f32 %v497_v16, %v468_v22  ;;  %v533_v12 = vrot.slane %v346_v56, %v532_v10 }
 0x180   :  { %v513_v27 = vadd.f32 %v509_v18, %v471_v23  ;;  %v512_v28 = vadd.f32 %v505_v20, %v470_v24 }
 0x181   :  { %v515_v29 = vmax.f32 %v511_v25, 0.0  ;;  %v514_v30 = vmax.f32 %v510_v26, 0.0 }
 0x182   :  { %v517_v31 = vmax.f32 %v513_v27, 0.0  ;;  %v516_v32 = vmax.f32 %v512_v28, 0.0 }
 0x183   :  { %v519_v33 = vpack.c.bf16 %v515_v29, %v515_v29  ;;  %v518_v34 = vpack.c.bf16 %v514_v30, %v514_v30 }
 0x184   :  { %v521_v35 = vpack.c.bf16 %v517_v31, %v517_v31  ;;  %v520_v36 = vpack.c.bf16 %v516_v32, %v516_v32 }
 0x185   :  { %606 = vmatprep.mubr.bf16.mxu1 %v519_v33 }
 0x186   :  { %646 = vmatprep.mubr.bf16.mxu0 %v521_v35  ;;  %607 = vmatmul.mubr.bf16.vlgmr.msra.gmra.mrb[4].mxu1 %v518_v34 }
 0x187   :  { %647 = vmatmul.mubr.bf16.vlgmr.msra.gmra.mrb[4].mxu0 %v520_v36 }
 0x259   :  { %v608_v13 = vpop.f32.mrb[4].mxu1 }
 0x25a   :  { %v609_v11 = vadd.f32 %v608_v13, %v533_v12  ;;  %v648_v37 = vpop.f32.mrb[4].mxu0  ;;  %v610_v38 = vpop.f32.mrb[5].mxu1 }
 0x25b   :  { %v650_v39 = vpop.f32.mrb[5].mxu0  ;;  %v611_v40 = vpop.f32.mrb[6].mxu1 }
 0x25c   :  { %v649_v41 = vadd.f32 %v648_v37, %v609_v11  ;;  %v651_v42 = vpop.f32.mrb[6].mxu0  ;;  %v612_v43 = vpop.f32.mrb[7].mxu1 }
 0x25d   :  { %v652_v44 = vpop.f32.mrb[7].mxu0 }
 0x25e   :  { %vm654_vm2 = vcmp.ge.f32.partialorder %v649_v41, 0.0  ;;  %v655_v45 = vmul.f32 0.01, %v649_v41 }
 0x260   :  { %v656_v46 = vsel %vm654_vm2, %v649_v41, %v655_v45 }
 0x261   :  { %657 = vst.msk [vmem:[#allocation14] sm:$0xff] %vm260_vm1, %v656_v46 }
 0x262   :  { %925 = shalt.err (!%p922_p5)
}
 0x263   :  { %s926_s12 = scalar_lea.hbm %s1158_s6, 128 }
 0x264   :  { %p927_p6 = scmp.ne.s32.totalorder %s1158_s6, %s926_s12  ;;  %p930_p7 = scmp.lt.u32.totalorder %s926_s12, %s1158_s6 }
 0x266   :  { %p932_p8 = pnand %p930_p7, %p927_p6 }
 0x268   :  { %935 = shalt.err (!%p932_p8)
}
 0x269   :  { %667 = dma.vmem_to_hbm [thread:$0]  %s665_s16, 128, %s1158_s6, [#allocation7]  }
 0x26a   :  { %944 = dma.done.wait [#allocation7], 128  }
 0x26b   :  { %945 = vsyncadd [#allocation7], 4294967168 }
 0x26c   :  { %671 = vsyncpa [#allocation6], 1 }
 0x26d   :  { %672 = vsyncpa [#allocation9], 1 }
 0x26e   :  { %673 = vsyncpa [#allocation12], 1 }
 0x26f   :  { %674 = vsyncpa [#allocation7], 1 }

</bundles_post_ra>
